<compile_context>
chip_gen: v6e
topology: v6e:2x2x1
jax: 0.10.0
libtpu: 0.0.40
codegen_flags: <defaults>
</compile_context>

<pallas_src>
import math

import jax
import jax.numpy as jnp
from jax.experimental import pallas as pl
from jax.experimental.pallas import tpu as pltpu

# ---- small test-sized hyper-parameters consistent with the module ----
B = 2           # batch
T = 8           # num_tokens (small test size; module default is 100)
E = 20          # embedding_size
H1 = 20         # hidden1 == attention embed_dim
NUM_HEADS = 4
HEAD_DIM = H1 // NUM_HEADS   # 5
H2 = 60         # hidden2
H3 = 20         # hidden3
C = 2           # num_classes


def attention_net_kernel(x_ref, pe_ref, bias_ref, hmask_ref,
                         wqkv_ref, bqkv_ref, wo_ref, bo_ref,
                         w2_ref, b2_ref, w3_ref, b3_ref, w4_ref, b4_ref,
                         out_ref):
    f32 = jnp.float32

    # positional encoding + fused (fc1 composed into q/k/v) projection,
    # whole batch in ONE matmul.  q is already pre-scaled by 1/sqrt(head_dim).
    x = x_ref[...] + pe_ref[...]                                      # (B*T, E)
    qkv = jnp.dot(x, wqkv_ref[...],
                  preferred_element_type=f32) + bqkv_ref[...]         # (B*T, 3*H1)

    q = qkv[:, 0:H1].reshape(B, T, H1)                                # (B, T, H1)
    k = qkv[:, H1:2 * H1].reshape(B, T, H1)
    v = qkv[:, 2 * H1:3 * H1].reshape(B, T, H1)

    bias = bias_ref[...]                                              # (B, 1, T): 0 / -1e30
    masks = hmask_ref[...]                                            # (NUM_HEADS, H1)

    # Multi-head attention via head one-hot lane masks: masking q restricts the
    # score contraction to that head's features; masking v restricts the
    # context contribution to that head's output lanes.  Static head loop,
    # batched einsums (batch dim b, single contracting dim), one out-projection.
    ctx = jnp.zeros((B, T, H1), dtype=f32)
    for h in range(NUM_HEADS):                                        # static unroll
        mh = masks[h:h + 1, :]                                        # (1, H1)
        s = jnp.einsum('btd,bsd->bts', q * mh, k,
                       preferred_element_type=f32) + bias             # (B, T, T)
        m = jnp.max(s, axis=-1, keepdims=True)
        p = jnp.exp(s - m)
        p = p / jnp.sum(p, axis=-1, keepdims=True)                    # softmax over keys
        ctx = ctx + jnp.einsum('bts,bsd->btd', p, v * mh,
                               preferred_element_type=f32)            # (B, T, H1)

    attn = jnp.dot(ctx.reshape(B * T, H1), wo_ref[...],
                   preferred_element_type=f32) + bo_ref[...]          # (B*T, H1)

    # flatten (row-major over (T, H1)) + fc2 as ONE matmul for the whole batch.
    # Built with static lane concats of per-token (B, H1) slabs — no
    # minor-dim-merging reshape, no tiny per-token matmuls.
    attn3 = attn.reshape(B, T, H1)                                    # major-dims split
    flat = jnp.concatenate([attn3[:, t, :] for t in range(T)], axis=1)  # (B, T*H1)

    h2 = jnp.maximum(jnp.dot(flat, w2_ref[...],
                             preferred_element_type=f32) + b2_ref[...], 0.0)
    h3 = jnp.maximum(jnp.dot(h2, w3_ref[...],
                             preferred_element_type=f32) + b3_ref[...], 0.0)
    out_ref[...] = jnp.dot(h3, w4_ref[...],
                           preferred_element_type=f32) + b4_ref[...]  # (B, C)


@jax.jit
def attention_network(x, mask, kp):
    # hoist key_padding_mask -> additive bias (finite, avoids inf-inf NaN)
    bias = jnp.where(mask > 0.5, -1e30, 0.0).astype(jnp.float32).reshape(B, 1, T)
    x2d = x.reshape(B * T, E)

    spec2 = lambda s: pl.BlockSpec(s, lambda i: (0, 0))
    spec3 = lambda s: pl.BlockSpec(s, lambda i: (0, 0, 0))

    in_specs = [
        spec2((B * T, E)),            # x (pos-enc added in-kernel)
        spec2((B * T, E)),            # pe (tiled over batch)
        spec3((B, 1, T)),             # key-padding additive bias
        spec2((NUM_HEADS, H1)),       # head one-hot lane masks
        spec2((E, 3 * H1)), spec2((1, 3 * H1)),   # fused fc1∘{q,k,v} projection
        spec2((H1, H1)), spec2((1, H1)),          # attention out-projection
        spec2((T * H1, H2)), spec2((1, H2)),      # fc2
        spec2((H2, H3)), spec2((1, H3)),          # fc3
        spec2((H3, C)), spec2((1, C)),            # fc4
    ]

    # Single grid step (no per-sample grid): the kernel is tiny and overhead
    # bound.  If B scales up (esp. on v7x with 2 TCs), reintroduce a "parallel"
    # batch axis blocked at B//2 to use both TensorCores.
    out = pl.pallas_call(
        attention_net_kernel,
        grid=(1,),
        in_specs=in_specs,
        out_specs=spec2((B, C)),
        out_shape=jax.ShapeDtypeStruct((B, C), jnp.float32),
        compiler_params=pltpu.CompilerParams(
            dimension_semantics=("arbitrary",)),
    )(x2d, kp["pe2"], bias, kp["head_masks"],
      kp["wqkv"], kp["bqkv"], kp["wo"], kp["bo"],
      kp["w2flat"], kp["b2"], kp["w3"], kp["b3"], kp["w4"], kp["b4"])
    return out


def positional_encoding(length, d_model):
    position = jnp.arange(length, dtype=jnp.float32)[:, None]
    div_term = jnp.exp(jnp.arange(0, d_model, 2, dtype=jnp.float32)
                       * (-math.log(10000.0) / d_model))
    pe = jnp.zeros((length, d_model), dtype=jnp.float32)
    pe = pe.at[:, 0::2].set(jnp.sin(position * div_term))
    pe = pe.at[:, 1::2].set(jnp.cos(position * div_term))
    return pe


def init_params(key):
    def dense(k, fan_in, fan_out):
        kw, kb = jax.random.split(k)
        lim = 1.0 / math.sqrt(fan_in)
        w = jax.random.uniform(kw, (fan_in, fan_out), jnp.float32, -lim, lim)
        b = jax.random.uniform(kb, (1, fan_out), jnp.float32, -lim, lim)
        return w, b

    keys = jax.random.split(key, 8)
    w1, b1 = dense(keys[0], E, H1)
    wq, bq = dense(keys[1], H1, H1)
    wk, bk = dense(keys[2], H1, H1)
    wv, bv = dense(keys[3], H1, H1)
    wo, bo = dense(keys[4], H1, H1)
    w2, b2 = dense(keys[5], T * H1, H2)
    w3, b3 = dense(keys[6], H2, H3)
    w4, b4 = dense(keys[7], H3, C)
    return dict(pe=positional_encoding(T, E),
                w1=w1, b1=b1, wq=wq, bq=bq, wk=wk, bk=bk, wv=wv, bv=bv,
                wo=wo, bo=bo, w2flat=w2, b2=b2, w3=w3, b3=b3, w4=w4, b4=b4)


def precompute_kernel_params(p):
    """Trace-time weight composition: fold fc1 into q/k/v and the attention
    scale into q.  Keep f32 at these toy sizes (use bf16 params + f32 accum on
    v6e/v7x only if scaled to production shapes)."""
    scale = 1.0 / math.sqrt(HEAD_DIM)
    wq_c = (p["w1"] @ p["wq"]) * scale
    bq_c = (p["b1"] @ p["wq"] + p["bq"]) * scale
    wk_c = p["w1"] @ p["wk"]
    bk_c = p["b1"] @ p["wk"] + p["bk"]
    wv_c = p["w1"] @ p["wv"]
    bv_c = p["b1"] @ p["wv"] + p["bv"]
    wqkv = jnp.concatenate([wq_c, wk_c, wv_c], axis=1)        # (E, 3*H1)
    bqkv = jnp.concatenate([bq_c, bk_c, bv_c], axis=1)        # (1, 3*H1)
    head_masks = jnp.repeat(jnp.eye(NUM_HEADS, dtype=jnp.float32),
                            HEAD_DIM, axis=1)                 # (NUM_HEADS, H1)
    pe2 = jnp.tile(p["pe"], (B, 1))                           # (B*T, E)
    return dict(pe2=pe2, head_masks=head_masks, wqkv=wqkv, bqkv=bqkv,
                wo=p["wo"], bo=p["bo"], w2flat=p["w2flat"], b2=p["b2"],
                w3=p["w3"], b3=p["b3"], w4=p["w4"], b4=p["b4"])


def reference_forward(x, mask, params):
    """Pure-JAX reference mirroring the PyTorch forward (inference mode)."""
    x = x + params["pe"][None]
    h = x @ params["w1"] + params["b1"]
    q = h @ params["wq"] + params["bq"]
    k = h @ params["wk"] + params["bk"]
    v = h @ params["wv"] + params["bv"]

    def split(a):
        return a.reshape(B, T, NUM_HEADS, HEAD_DIM).transpose(0, 2, 1, 3)

    qh, kh, vh = split(q), split(k), split(v)
    scores = jnp.einsum("bhtd,bhsd->bhts", qh, kh) / math.sqrt(HEAD_DIM)
    bias = jnp.where(mask[:, None, None, :] > 0.5, -jnp.inf, 0.0)
    p = jax.nn.softmax(scores + bias, axis=-1)
    ctx = jnp.einsum("bhts,bhsd->bhtd", p, vh).transpose(0, 2, 1, 3)
    ctx = ctx.reshape(B, T, H1)
    o = ctx @ params["wo"] + params["bo"]
    flat = o.reshape(B, T * H1)
    h2 = jax.nn.relu(flat @ params["w2flat"] + params["b2"])
    h3 = jax.nn.relu(h2 @ params["w3"] + params["b3"])
    return h3 @ params["w4"] + params["b4"]


if __name__ == "__main__":
    key = jax.random.PRNGKey(0)
    kx, kparam = jax.random.split(key)

    x = jax.random.normal(kx, (B, T, E), dtype=jnp.float32)
    # key_padding_mask: 1.0 (True) == ignore this key; keep >=1 valid key per row
    lengths = jnp.array([6, 8], dtype=jnp.int32)
    mask = (jnp.arange(T)[None, :] >= lengths[:, None]).astype(jnp.float32)

    params = init_params(kparam)
    kparams = precompute_kernel_params(params)

    out = attention_network(x, mask, kparams)
    out = jax.block_until_ready(out)

    ref = reference_forward(x, mask, params)
    assert out.shape == (B, C)
    assert jnp.allclose(out, ref, atol=1e-4, rtol=1e-4), (out, ref)

    # TODO(synk): stochastic dropout (training mode) not modeled; inference identity used.
    print("KERNEL_OK")
</pallas_src>

<mosaic_0001>
module attributes {stable_mosaic.version = 11 : i64} {
  func.func @attention_net_kernel(%arg0: i32, %arg1: memref<16x20xf32, #tpu.memory_space<vmem>>, %arg2: memref<16x20xf32, #tpu.memory_space<vmem>>, %arg3: memref<2x1x8xf32, #tpu.memory_space<vmem>>, %arg4: memref<4x20xf32, #tpu.memory_space<vmem>>, %arg5: memref<20x60xf32, #tpu.memory_space<vmem>>, %arg6: memref<1x60xf32, #tpu.memory_space<vmem>>, %arg7: memref<20x20xf32, #tpu.memory_space<vmem>>, %arg8: memref<1x20xf32, #tpu.memory_space<vmem>>, %arg9: memref<160x60xf32, #tpu.memory_space<vmem>>, %arg10: memref<1x60xf32, #tpu.memory_space<vmem>>, %arg11: memref<60x20xf32, #tpu.memory_space<vmem>>, %arg12: memref<1x20xf32, #tpu.memory_space<vmem>>, %arg13: memref<20x2xf32, #tpu.memory_space<vmem>>, %arg14: memref<1x2xf32, #tpu.memory_space<vmem>>, %arg15: memref<2x2xf32, #tpu.memory_space<vmem>>) attributes {dimension_semantics = [#tpu.dimension_semantics<arbitrary>], iteration_bounds = array<i64: 1>, scalar_prefetch = 0 : i64, scratch_operands = 0 : i64, tpu.core_type = #tpu.core_type<tc>, window_params = [{pipeline_mode = #tpu.pipeline_mode<synchronous>, transform_indices = @transform_0, window_bounds = array<i64: 16, 20>}, {pipeline_mode = #tpu.pipeline_mode<synchronous>, transform_indices = @transform_1, window_bounds = array<i64: 16, 20>}, {pipeline_mode = #tpu.pipeline_mode<synchronous>, transform_indices = @transform_2, window_bounds = array<i64: 2, 1, 8>}, {pipeline_mode = #tpu.pipeline_mode<synchronous>, transform_indices = @transform_3, window_bounds = array<i64: 4, 20>}, {pipeline_mode = #tpu.pipeline_mode<synchronous>, transform_indices = @transform_4, window_bounds = array<i64: 20, 60>}, {pipeline_mode = #tpu.pipeline_mode<synchronous>, transform_indices = @transform_5, window_bounds = array<i64: 1, 60>}, {pipeline_mode = #tpu.pipeline_mode<synchronous>, transform_indices = @transform_6, window_bounds = array<i64: 20, 20>}, {pipeline_mode = #tpu.pipeline_mode<synchronous>, transform_indices = @transform_7, window_bounds = array<i64: 1, 20>}, {pipeline_mode = #tpu.pipeline_mode<synchronous>, transform_indices = @transform_8, window_bounds = array<i64: 160, 60>}, {pipeline_mode = #tpu.pipeline_mode<synchronous>, transform_indices = @transform_9, window_bounds = array<i64: 1, 60>}, {pipeline_mode = #tpu.pipeline_mode<synchronous>, transform_indices = @transform_10, window_bounds = array<i64: 60, 20>}, {pipeline_mode = #tpu.pipeline_mode<synchronous>, transform_indices = @transform_11, window_bounds = array<i64: 1, 20>}, {pipeline_mode = #tpu.pipeline_mode<synchronous>, transform_indices = @transform_12, window_bounds = array<i64: 20, 2>}, {pipeline_mode = #tpu.pipeline_mode<synchronous>, transform_indices = @transform_13, window_bounds = array<i64: 1, 2>}, {pipeline_mode = #tpu.pipeline_mode<synchronous>, transform_indices = @transform_14, window_bounds = array<i64: 2, 2>}]} {
    %c0 = arith.constant 0 : index
    %c0_0 = arith.constant 0 : index
    %0 = vector.load %arg1[%c0, %c0_0] : memref<16x20xf32, #tpu.memory_space<vmem>>, vector<16x20xf32>
    %c0_1 = arith.constant 0 : index
    %c0_2 = arith.constant 0 : index
    %1 = vector.load %arg2[%c0_1, %c0_2] : memref<16x20xf32, #tpu.memory_space<vmem>>, vector<16x20xf32>
    %2 = arith.addf %0, %1 : vector<16x20xf32>
    %c0_3 = arith.constant 0 : index
    %c0_4 = arith.constant 0 : index
    %3 = vector.load %arg5[%c0_3, %c0_4] : memref<20x60xf32, #tpu.memory_space<vmem>>, vector<20x60xf32>
    %cst = arith.constant dense<0.000000e+00> : vector<16x60xf32>
    %4 = tpu.matmul %2, %3, %cst {dimension_numbers = #tpu.dot_dimension_numbers<[1], [0], [0], [1], [0, 0, 1, 1], [], []>} : vector<16x20xf32>, vector<20x60xf32>, vector<16x60xf32> -> vector<16x60xf32>
    %c0_5 = arith.constant 0 : index
    %c0_6 = arith.constant 0 : index
    %5 = vector.load %arg6[%c0_5, %c0_6] : memref<1x60xf32, #tpu.memory_space<vmem>>, vector<1x60xf32>
    %6 = vector.broadcast %5 : vector<1x60xf32> to vector<16x60xf32>
    %7 = arith.addf %4, %6 : vector<16x60xf32>
    %8 = vector.extract_strided_slice %7 {offsets = [0, 0], sizes = [16, 20], strides = [1, 1]} : vector<16x60xf32> to vector<16x20xf32>
    %9 = vector.shape_cast %8 : vector<16x20xf32> to vector<2x8x20xf32>
    %10 = vector.extract_strided_slice %7 {offsets = [0, 20], sizes = [16, 20], strides = [1, 1]} : vector<16x60xf32> to vector<16x20xf32>
    %11 = vector.shape_cast %10 : vector<16x20xf32> to vector<2x8x20xf32>
    %12 = vector.extract_strided_slice %7 {offsets = [0, 40], sizes = [16, 20], strides = [1, 1]} : vector<16x60xf32> to vector<16x20xf32>
    %13 = vector.shape_cast %12 : vector<16x20xf32> to vector<2x8x20xf32>
    %c0_7 = arith.constant 0 : index
    %c0_8 = arith.constant 0 : index
    %c0_9 = arith.constant 0 : index
    %14 = vector.load %arg3[%c0_7, %c0_8, %c0_9] : memref<2x1x8xf32, #tpu.memory_space<vmem>>, vector<2x1x8xf32>
    %c0_10 = arith.constant 0 : index
    %c0_11 = arith.constant 0 : index
    %15 = vector.load %arg4[%c0_10, %c0_11] : memref<4x20xf32, #tpu.memory_space<vmem>>, vector<4x20xf32>
    %cst_12 = arith.constant 0.000000e+00 : f32
    %16 = vector.broadcast %cst_12 : f32 to vector<2x8x20xf32>
    %17 = vector.extract_strided_slice %15 {offsets = [0, 0], sizes = [1, 20], strides = [1, 1]} : vector<4x20xf32> to vector<1x20xf32>
    %18 = vector.shape_cast %17 : vector<1x20xf32> to vector<1x1x20xf32>
    %19 = vector.broadcast %18 : vector<1x1x20xf32> to vector<2x8x20xf32>
    %20 = arith.mulf %9, %19 : vector<2x8x20xf32>
    "tpu.trace_start"() <{level = 10 : i32, message = "btd,bsd->bts"}> : () -> ()
    %cst_13 = arith.constant dense<0.000000e+00> : vector<2x8x8xf32>
    %21 = tpu.matmul %20, %11, %cst_13 {dimension_numbers = #tpu.dot_dimension_numbers<[2], [2], [1], [1], [0, 0, 0, 1, 1, 1], [0], [0]>} : vector<2x8x20xf32>, vector<2x8x20xf32>, vector<2x8x8xf32> -> vector<2x8x8xf32>
    "tpu.trace_stop"() : () -> ()
    %22 = vector.broadcast %14 : vector<2x1x8xf32> to vector<2x8x8xf32>
    %23 = arith.addf %21, %22 : vector<2x8x8xf32>
    %cst_14 = arith.constant dense<0xFF800000> : vector<2x8xf32>
    %24 = vector.multi_reduction <maximumf>, %23, %cst_14 [2] : vector<2x8x8xf32> to vector<2x8xf32>
    %25 = vector.shape_cast %24 : vector<2x8xf32> to vector<2x8x1xf32>
    %26 = vector.broadcast %25 : vector<2x8x1xf32> to vector<2x8x8xf32>
    %27 = arith.subf %23, %26 : vector<2x8x8xf32>
    %28 = math.exp %27 : vector<2x8x8xf32>
    %cst_15 = arith.constant dense<0.000000e+00> : vector<2x8xf32>
    %29 = vector.multi_reduction <add>, %28, %cst_15 [2] : vector<2x8x8xf32> to vector<2x8xf32>
    %30 = vector.shape_cast %29 : vector<2x8xf32> to vector<2x8x1xf32>
    %31 = vector.broadcast %30 : vector<2x8x1xf32> to vector<2x8x8xf32>
    %32 = arith.divf %28, %31 : vector<2x8x8xf32>
    %33 = vector.shape_cast %17 : vector<1x20xf32> to vector<1x1x20xf32>
    %34 = vector.broadcast %33 : vector<1x1x20xf32> to vector<2x8x20xf32>
    %35 = arith.mulf %13, %34 : vector<2x8x20xf32>
    "tpu.trace_start"() <{level = 10 : i32, message = "bts,bsd->btd"}> : () -> ()
    %cst_16 = arith.constant dense<0.000000e+00> : vector<2x8x20xf32>
    %36 = tpu.matmul %32, %35, %cst_16 {dimension_numbers = #tpu.dot_dimension_numbers<[2], [1], [1], [2], [0, 0, 0, 1, 1, 2], [0], [0]>} : vector<2x8x8xf32>, vector<2x8x20xf32>, vector<2x8x20xf32> -> vector<2x8x20xf32>
    "tpu.trace_stop"() : () -> ()
    %37 = arith.addf %16, %36 : vector<2x8x20xf32>
    %38 = vector.extract_strided_slice %15 {offsets = [1, 0], sizes = [1, 20], strides = [1, 1]} : vector<4x20xf32> to vector<1x20xf32>
    %39 = vector.shape_cast %38 : vector<1x20xf32> to vector<1x1x20xf32>
    %40 = vector.broadcast %39 : vector<1x1x20xf32> to vector<2x8x20xf32>
    %41 = arith.mulf %9, %40 : vector<2x8x20xf32>
    "tpu.trace_start"() <{level = 10 : i32, message = "btd,bsd->bts"}> : () -> ()
    %cst_17 = arith.constant dense<0.000000e+00> : vector<2x8x8xf32>
    %42 = tpu.matmul %41, %11, %cst_17 {dimension_numbers = #tpu.dot_dimension_numbers<[2], [2], [1], [1], [0, 0, 0, 1, 1, 1], [0], [0]>} : vector<2x8x20xf32>, vector<2x8x20xf32>, vector<2x8x8xf32> -> vector<2x8x8xf32>
    "tpu.trace_stop"() : () -> ()
    %43 = vector.broadcast %14 : vector<2x1x8xf32> to vector<2x8x8xf32>
    %44 = arith.addf %42, %43 : vector<2x8x8xf32>
    %cst_18 = arith.constant dense<0xFF800000> : vector<2x8xf32>
    %45 = vector.multi_reduction <maximumf>, %44, %cst_18 [2] : vector<2x8x8xf32> to vector<2x8xf32>
    %46 = vector.shape_cast %45 : vector<2x8xf32> to vector<2x8x1xf32>
    %47 = vector.broadcast %46 : vector<2x8x1xf32> to vector<2x8x8xf32>
    %48 = arith.subf %44, %47 : vector<2x8x8xf32>
    %49 = math.exp %48 : vector<2x8x8xf32>
    %cst_19 = arith.constant dense<0.000000e+00> : vector<2x8xf32>
    %50 = vector.multi_reduction <add>, %49, %cst_19 [2] : vector<2x8x8xf32> to vector<2x8xf32>
    %51 = vector.shape_cast %50 : vector<2x8xf32> to vector<2x8x1xf32>
    %52 = vector.broadcast %51 : vector<2x8x1xf32> to vector<2x8x8xf32>
    %53 = arith.divf %49, %52 : vector<2x8x8xf32>
    %54 = vector.shape_cast %38 : vector<1x20xf32> to vector<1x1x20xf32>
    %55 = vector.broadcast %54 : vector<1x1x20xf32> to vector<2x8x20xf32>
    %56 = arith.mulf %13, %55 : vector<2x8x20xf32>
    "tpu.trace_start"() <{level = 10 : i32, message = "bts,bsd->btd"}> : () -> ()
    %cst_20 = arith.constant dense<0.000000e+00> : vector<2x8x20xf32>
    %57 = tpu.matmul %53, %56, %cst_20 {dimension_numbers = #tpu.dot_dimension_numbers<[2], [1], [1], [2], [0, 0, 0, 1, 1, 2], [0], [0]>} : vector<2x8x8xf32>, vector<2x8x20xf32>, vector<2x8x20xf32> -> vector<2x8x20xf32>
    "tpu.trace_stop"() : () -> ()
    %58 = arith.addf %37, %57 : vector<2x8x20xf32>
    %59 = vector.extract_strided_slice %15 {offsets = [2, 0], sizes = [1, 20], strides = [1, 1]} : vector<4x20xf32> to vector<1x20xf32>
    %60 = vector.shape_cast %59 : vector<1x20xf32> to vector<1x1x20xf32>
    %61 = vector.broadcast %60 : vector<1x1x20xf32> to vector<2x8x20xf32>
    %62 = arith.mulf %9, %61 : vector<2x8x20xf32>
    "tpu.trace_start"() <{level = 10 : i32, message = "btd,bsd->bts"}> : () -> ()
    %cst_21 = arith.constant dense<0.000000e+00> : vector<2x8x8xf32>
    %63 = tpu.matmul %62, %11, %cst_21 {dimension_numbers = #tpu.dot_dimension_numbers<[2], [2], [1], [1], [0, 0, 0, 1, 1, 1], [0], [0]>} : vector<2x8x20xf32>, vector<2x8x20xf32>, vector<2x8x8xf32> -> vector<2x8x8xf32>
    "tpu.trace_stop"() : () -> ()
    %64 = vector.broadcast %14 : vector<2x1x8xf32> to vector<2x8x8xf32>
    %65 = arith.addf %63, %64 : vector<2x8x8xf32>
    %cst_22 = arith.constant dense<0xFF800000> : vector<2x8xf32>
    %66 = vector.multi_reduction <maximumf>, %65, %cst_22 [2] : vector<2x8x8xf32> to vector<2x8xf32>
    %67 = vector.shape_cast %66 : vector<2x8xf32> to vector<2x8x1xf32>
    %68 = vector.broadcast %67 : vector<2x8x1xf32> to vector<2x8x8xf32>
    %69 = arith.subf %65, %68 : vector<2x8x8xf32>
    %70 = math.exp %69 : vector<2x8x8xf32>
    %cst_23 = arith.constant dense<0.000000e+00> : vector<2x8xf32>
    %71 = vector.multi_reduction <add>, %70, %cst_23 [2] : vector<2x8x8xf32> to vector<2x8xf32>
    %72 = vector.shape_cast %71 : vector<2x8xf32> to vector<2x8x1xf32>
    %73 = vector.broadcast %72 : vector<2x8x1xf32> to vector<2x8x8xf32>
    %74 = arith.divf %70, %73 : vector<2x8x8xf32>
    %75 = vector.shape_cast %59 : vector<1x20xf32> to vector<1x1x20xf32>
    %76 = vector.broadcast %75 : vector<1x1x20xf32> to vector<2x8x20xf32>
    %77 = arith.mulf %13, %76 : vector<2x8x20xf32>
    "tpu.trace_start"() <{level = 10 : i32, message = "bts,bsd->btd"}> : () -> ()
    %cst_24 = arith.constant dense<0.000000e+00> : vector<2x8x20xf32>
    %78 = tpu.matmul %74, %77, %cst_24 {dimension_numbers = #tpu.dot_dimension_numbers<[2], [1], [1], [2], [0, 0, 0, 1, 1, 2], [0], [0]>} : vector<2x8x8xf32>, vector<2x8x20xf32>, vector<2x8x20xf32> -> vector<2x8x20xf32>
    "tpu.trace_stop"() : () -> ()
    %79 = arith.addf %58, %78 : vector<2x8x20xf32>
    %80 = vector.extract_strided_slice %15 {offsets = [3, 0], sizes = [1, 20], strides = [1, 1]} : vector<4x20xf32> to vector<1x20xf32>
    %81 = vector.shape_cast %80 : vector<1x20xf32> to vector<1x1x20xf32>
    %82 = vector.broadcast %81 : vector<1x1x20xf32> to vector<2x8x20xf32>
    %83 = arith.mulf %9, %82 : vector<2x8x20xf32>
    "tpu.trace_start"() <{level = 10 : i32, message = "btd,bsd->bts"}> : () -> ()
    %cst_25 = arith.constant dense<0.000000e+00> : vector<2x8x8xf32>
    %84 = tpu.matmul %83, %11, %cst_25 {dimension_numbers = #tpu.dot_dimension_numbers<[2], [2], [1], [1], [0, 0, 0, 1, 1, 1], [0], [0]>} : vector<2x8x20xf32>, vector<2x8x20xf32>, vector<2x8x8xf32> -> vector<2x8x8xf32>
    "tpu.trace_stop"() : () -> ()
    %85 = vector.broadcast %14 : vector<2x1x8xf32> to vector<2x8x8xf32>
    %86 = arith.addf %84, %85 : vector<2x8x8xf32>
    %cst_26 = arith.constant dense<0xFF800000> : vector<2x8xf32>
    %87 = vector.multi_reduction <maximumf>, %86, %cst_26 [2] : vector<2x8x8xf32> to vector<2x8xf32>
    %88 = vector.shape_cast %87 : vector<2x8xf32> to vector<2x8x1xf32>
    %89 = vector.broadcast %88 : vector<2x8x1xf32> to vector<2x8x8xf32>
    %90 = arith.subf %86, %89 : vector<2x8x8xf32>
    %91 = math.exp %90 : vector<2x8x8xf32>
    %cst_27 = arith.constant dense<0.000000e+00> : vector<2x8xf32>
    %92 = vector.multi_reduction <add>, %91, %cst_27 [2] : vector<2x8x8xf32> to vector<2x8xf32>
    %93 = vector.shape_cast %92 : vector<2x8xf32> to vector<2x8x1xf32>
    %94 = vector.broadcast %93 : vector<2x8x1xf32> to vector<2x8x8xf32>
    %95 = arith.divf %91, %94 : vector<2x8x8xf32>
    %96 = vector.shape_cast %80 : vector<1x20xf32> to vector<1x1x20xf32>
    %97 = vector.broadcast %96 : vector<1x1x20xf32> to vector<2x8x20xf32>
    %98 = arith.mulf %13, %97 : vector<2x8x20xf32>
    "tpu.trace_start"() <{level = 10 : i32, message = "bts,bsd->btd"}> : () -> ()
    %cst_28 = arith.constant dense<0.000000e+00> : vector<2x8x20xf32>
    %99 = tpu.matmul %95, %98, %cst_28 {dimension_numbers = #tpu.dot_dimension_numbers<[2], [1], [1], [2], [0, 0, 0, 1, 1, 2], [0], [0]>} : vector<2x8x8xf32>, vector<2x8x20xf32>, vector<2x8x20xf32> -> vector<2x8x20xf32>
    "tpu.trace_stop"() : () -> ()
    %100 = arith.addf %79, %99 : vector<2x8x20xf32>
    %101 = vector.shape_cast %100 : vector<2x8x20xf32> to vector<16x20xf32>
    %c0_29 = arith.constant 0 : index
    %c0_30 = arith.constant 0 : index
    %102 = vector.load %arg7[%c0_29, %c0_30] : memref<20x20xf32, #tpu.memory_space<vmem>>, vector<20x20xf32>
    %cst_31 = arith.constant dense<0.000000e+00> : vector<16x20xf32>
    %103 = tpu.matmul %101, %102, %cst_31 {dimension_numbers = #tpu.dot_dimension_numbers<[1], [0], [0], [1], [0, 0, 1, 1], [], []>} : vector<16x20xf32>, vector<20x20xf32>, vector<16x20xf32> -> vector<16x20xf32>
    %c0_32 = arith.constant 0 : index
    %c0_33 = arith.constant 0 : index
    %104 = vector.load %arg8[%c0_32, %c0_33] : memref<1x20xf32, #tpu.memory_space<vmem>>, vector<1x20xf32>
    %105 = vector.broadcast %104 : vector<1x20xf32> to vector<16x20xf32>
    %106 = arith.addf %103, %105 : vector<16x20xf32>
    %107 = vector.shape_cast %106 : vector<16x20xf32> to vector<2x8x20xf32>
    %108 = vector.extract_strided_slice %107 {offsets = [0, 0, 0], sizes = [2, 1, 20], strides = [1, 1, 1]} : vector<2x8x20xf32> to vector<2x1x20xf32>
    %109 = vector.shape_cast %108 : vector<2x1x20xf32> to vector<2x20xf32>
    %110 = vector.extract_strided_slice %107 {offsets = [0, 1, 0], sizes = [2, 1, 20], strides = [1, 1, 1]} : vector<2x8x20xf32> to vector<2x1x20xf32>
    %111 = vector.shape_cast %110 : vector<2x1x20xf32> to vector<2x20xf32>
    %112 = vector.extract_strided_slice %107 {offsets = [0, 2, 0], sizes = [2, 1, 20], strides = [1, 1, 1]} : vector<2x8x20xf32> to vector<2x1x20xf32>
    %113 = vector.shape_cast %112 : vector<2x1x20xf32> to vector<2x20xf32>
    %114 = vector.extract_strided_slice %107 {offsets = [0, 3, 0], sizes = [2, 1, 20], strides = [1, 1, 1]} : vector<2x8x20xf32> to vector<2x1x20xf32>
    %115 = vector.shape_cast %114 : vector<2x1x20xf32> to vector<2x20xf32>
    %116 = vector.extract_strided_slice %107 {offsets = [0, 4, 0], sizes = [2, 1, 20], strides = [1, 1, 1]} : vector<2x8x20xf32> to vector<2x1x20xf32>
    %117 = vector.shape_cast %116 : vector<2x1x20xf32> to vector<2x20xf32>
    %118 = vector.extract_strided_slice %107 {offsets = [0, 5, 0], sizes = [2, 1, 20], strides = [1, 1, 1]} : vector<2x8x20xf32> to vector<2x1x20xf32>
    %119 = vector.shape_cast %118 : vector<2x1x20xf32> to vector<2x20xf32>
    %120 = vector.extract_strided_slice %107 {offsets = [0, 6, 0], sizes = [2, 1, 20], strides = [1, 1, 1]} : vector<2x8x20xf32> to vector<2x1x20xf32>
    %121 = vector.shape_cast %120 : vector<2x1x20xf32> to vector<2x20xf32>
    %122 = vector.extract_strided_slice %107 {offsets = [0, 7, 0], sizes = [2, 1, 20], strides = [1, 1, 1]} : vector<2x8x20xf32> to vector<2x1x20xf32>
    %123 = vector.shape_cast %122 : vector<2x1x20xf32> to vector<2x20xf32>
    %124 = tpu.concatenate %109, %111, %113, %115, %117, %119, %121, %123 in 1 : vector<2x20xf32>, vector<2x20xf32>, vector<2x20xf32>, vector<2x20xf32>, vector<2x20xf32>, vector<2x20xf32>, vector<2x20xf32>, vector<2x20xf32> -> vector<2x160xf32>
    %c0_34 = arith.constant 0 : index
    %c0_35 = arith.constant 0 : index
    %125 = vector.load %arg9[%c0_34, %c0_35] : memref<160x60xf32, #tpu.memory_space<vmem>>, vector<160x60xf32>
    %cst_36 = arith.constant dense<0.000000e+00> : vector<2x60xf32>
    %126 = tpu.matmul %124, %125, %cst_36 {dimension_numbers = #tpu.dot_dimension_numbers<[1], [0], [0], [1], [0, 0, 1, 1], [], []>} : vector<2x160xf32>, vector<160x60xf32>, vector<2x60xf32> -> vector<2x60xf32>
    %c0_37 = arith.constant 0 : index
    %c0_38 = arith.constant 0 : index
    %127 = vector.load %arg10[%c0_37, %c0_38] : memref<1x60xf32, #tpu.memory_space<vmem>>, vector<1x60xf32>
    %128 = vector.broadcast %127 : vector<1x60xf32> to vector<2x60xf32>
    %129 = arith.addf %126, %128 : vector<2x60xf32>
    %cst_39 = arith.constant 0.000000e+00 : f32
    %130 = vector.broadcast %cst_39 : f32 to vector<2x60xf32>
    %131 = arith.maximumf %129, %130 : vector<2x60xf32>
    %c0_40 = arith.constant 0 : index
    %c0_41 = arith.constant 0 : index
    %132 = vector.load %arg11[%c0_40, %c0_41] : memref<60x20xf32, #tpu.memory_space<vmem>>, vector<60x20xf32>
    %cst_42 = arith.constant dense<0.000000e+00> : vector<2x20xf32>
    %133 = tpu.matmul %131, %132, %cst_42 {dimension_numbers = #tpu.dot_dimension_numbers<[1], [0], [0], [1], [0, 0, 1, 1], [], []>} : vector<2x60xf32>, vector<60x20xf32>, vector<2x20xf32> -> vector<2x20xf32>
    %c0_43 = arith.constant 0 : index
    %c0_44 = arith.constant 0 : index
    %134 = vector.load %arg12[%c0_43, %c0_44] : memref<1x20xf32, #tpu.memory_space<vmem>>, vector<1x20xf32>
    %135 = vector.broadcast %134 : vector<1x20xf32> to vector<2x20xf32>
    %136 = arith.addf %133, %135 : vector<2x20xf32>
    %cst_45 = arith.constant 0.000000e+00 : f32
    %137 = vector.broadcast %cst_45 : f32 to vector<2x20xf32>
    %138 = arith.maximumf %136, %137 : vector<2x20xf32>
    %c0_46 = arith.constant 0 : index
    %c0_47 = arith.constant 0 : index
    %139 = vector.load %arg13[%c0_46, %c0_47] : memref<20x2xf32, #tpu.memory_space<vmem>>, vector<20x2xf32>
    %cst_48 = arith.constant dense<0.000000e+00> : vector<2x2xf32>
    %140 = tpu.matmul %138, %139, %cst_48 {dimension_numbers = #tpu.dot_dimension_numbers<[1], [0], [0], [1], [0, 0, 1, 1], [], []>} : vector<2x20xf32>, vector<20x2xf32>, vector<2x2xf32> -> vector<2x2xf32>
    %c0_49 = arith.constant 0 : index
    %c0_50 = arith.constant 0 : index
    %141 = vector.load %arg14[%c0_49, %c0_50] : memref<1x2xf32, #tpu.memory_space<vmem>>, vector<1x2xf32>
    %142 = vector.broadcast %141 : vector<1x2xf32> to vector<2x2xf32>
    %143 = arith.addf %140, %142 : vector<2x2xf32>
    %c0_51 = arith.constant 0 : index
    %c0_52 = arith.constant 0 : index
    %144 = vector.load %arg15[%c0_51, %c0_52] : memref<2x2xf32, #tpu.memory_space<vmem>>, vector<2x2xf32>
    tpu.vector_store %arg15[%c0_51, %c0_52], %143 {strides = array<i32>} : memref<2x2xf32, #tpu.memory_space<vmem>>, vector<2x2xf32>,
    return
  }
  func.func @transform_0(%arg0: i32) -> (i32, i32) {
    %c0_i32 = arith.constant 0 : i32
    %c0_i32_0 = arith.constant 0 : i32
    %c0_i32_1 = arith.constant 0 : i32
    return %c0_i32, %c0_i32_0 : i32, i32
  }
  func.func @transform_1(%arg0: i32) -> (i32, i32) {
    %c0_i32 = arith.constant 0 : i32
    %c0_i32_0 = arith.constant 0 : i32
    %c0_i32_1 = arith.constant 0 : i32
    return %c0_i32, %c0_i32_0 : i32, i32
  }
  func.func @transform_2(%arg0: i32) -> (i32, i32, i32) {
    %c0_i32 = arith.constant 0 : i32
    %c0_i32_0 = arith.constant 0 : i32
    %c0_i32_1 = arith.constant 0 : i32
    %c0_i32_2 = arith.constant 0 : i32
    return %c0_i32, %c0_i32_0, %c0_i32_1 : i32, i32, i32
  }
  func.func @transform_3(%arg0: i32) -> (i32, i32) {
    %c0_i32 = arith.constant 0 : i32
    %c0_i32_0 = arith.constant 0 : i32
    %c0_i32_1 = arith.constant 0 : i32
    return %c0_i32, %c0_i32_0 : i32, i32
  }
  func.func @transform_4(%arg0: i32) -> (i32, i32) {
    %c0_i32 = arith.constant 0 : i32
    %c0_i32_0 = arith.constant 0 : i32
    %c0_i32_1 = arith.constant 0 : i32
    return %c0_i32, %c0_i32_0 : i32, i32
  }
  func.func @transform_5(%arg0: i32) -> (i32, i32) {
    %c0_i32 = arith.constant 0 : i32
    %c0_i32_0 = arith.constant 0 : i32
    %c0_i32_1 = arith.constant 0 : i32
    return %c0_i32, %c0_i32_0 : i32, i32
  }
  func.func @transform_6(%arg0: i32) -> (i32, i32) {
    %c0_i32 = arith.constant 0 : i32
    %c0_i32_0 = arith.constant 0 : i32
    %c0_i32_1 = arith.constant 0 : i32
    return %c0_i32, %c0_i32_0 : i32, i32
  }
  func.func @transform_7(%arg0: i32) -> (i32, i32) {
    %c0_i32 = arith.constant 0 : i32
    %c0_i32_0 = arith.constant 0 : i32
    %c0_i32_1 = arith.constant 0 : i32
    return %c0_i32, %c0_i32_0 : i32, i32
  }
  func.func @transform_8(%arg0: i32) -> (i32, i32) {
    %c0_i32 = arith.constant 0 : i32
    %c0_i32_0 = arith.constant 0 : i32
    %c0_i32_1 = arith.constant 0 : i32
    return %c0_i32, %c0_i32_0 : i32, i32
  }
  func.func @transform_9(%arg0: i32) -> (i32, i32) {
    %c0_i32 = arith.constant 0 : i32
    %c0_i32_0 = arith.constant 0 : i32
    %c0_i32_1 = arith.constant 0 : i32
    return %c0_i32, %c0_i32_0 : i32, i32
  }
  func.func @transform_10(%arg0: i32) -> (i32, i32) {
    %c0_i32 = arith.constant 0 : i32
    %c0_i32_0 = arith.constant 0 : i32
    %c0_i32_1 = arith.constant 0 : i32
    return %c0_i32, %c0_i32_0 : i32, i32
  }
  func.func @transform_11(%arg0: i32) -> (i32, i32) {
    %c0_i32 = arith.constant 0 : i32
    %c0_i32_0 = arith.constant 0 : i32
    %c0_i32_1 = arith.constant 0 : i32
    return %c0_i32, %c0_i32_0 : i32, i32
  }
  func.func @transform_12(%arg0: i32) -> (i32, i32) {
    %c0_i32 = arith.constant 0 : i32
    %c0_i32_0 = arith.constant 0 : i32
    %c0_i32_1 = arith.constant 0 : i32
    return %c0_i32, %c0_i32_0 : i32, i32
  }
  func.func @transform_13(%arg0: i32) -> (i32, i32) {
    %c0_i32 = arith.constant 0 : i32
    %c0_i32_0 = arith.constant 0 : i32
    %c0_i32_1 = arith.constant 0 : i32
    return %c0_i32, %c0_i32_0 : i32, i32
  }
  func.func @transform_14(%arg0: i32) -> (i32, i32) {
    %c0_i32 = arith.constant 0 : i32
    %c0_i32_0 = arith.constant 0 : i32
    %c0_i32_1 = arith.constant 0 : i32
    return %c0_i32, %c0_i32_0 : i32, i32
  }
}

</mosaic_0001>

<bundles_post_ra>
// kernel: attention_network.1
= control target key start
LH: loop header
LB: loop body
LE: loop exit
PB: predicated region body
PF: predicated region fallthrough
CT: control target
= control target key end

     0   :  { %vm71_vm0 = vcmask 1043456   ;;  %vm64_vm1 = vcmask 162816   ;;  %s2735_s0 = inlined_call_operand.vmem [shape: f32[16,20], index: 0, kind: input, shape index: {}]   ;;  %s2736_s1 = inlined_call_operand.vmem [shape: f32[16,20], index: 1, kind: input, shape index: {}]   ;;  %s2737_s2 = inlined_call_operand.vmem [shape: f32[2,1,8], index: 2, kind: input, shape index: {}]   ;;  %s2738_s3 = inlined_call_operand.vmem [shape: f32[4,20], index: 3, kind: input, shape index: {}]   ;;  %s2739_s4 = inlined_call_operand.vmem [shape: f32[20,60], index: 4, kind: input, shape index: {}]   ;;  %s2740_s5 = inlined_call_operand.vmem [shape: f32[1,60], index: 5, kind: input, shape index: {}]   ;;  %s2741_s6 = inlined_call_operand.vmem [shape: f32[20,20], index: 6, kind: input, shape index: {}]   ;;  %s2742_s7 = inlined_call_operand.vmem [shape: f32[1,20], index: 7, kind: input, shape index: {}]   ;;  %s2743_s8 = inlined_call_operand.vmem [shape: f32[160,60], index: 8, kind: input, shape index: {}]   ;;  %s2744_s9 = inlined_call_operand.vmem [shape: f32[1,60], index: 9, kind: input, shape index: {}]   ;;  %s2745_s10 = inlined_call_operand.vmem [shape: f32[60,20], index: 10, kind: input, shape index: {}]   ;;  %s2746_s11 = inlined_call_operand.vmem [shape: f32[1,20], index: 11, kind: input, shape index: {}]   ;;  %s2747_s12 = inlined_call_operand.vmem [shape: f32[20,2], index: 12, kind: input, shape index: {}]   ;;  %s2748_s13 = inlined_call_operand.vmem [shape: f32[1,2], index: 13, kind: input, shape index: {}]   ;;  %s2749_s14 = inlined_call_operand.hbm [shape: f32[2,2], index: 14, kind: output, shape index: {}]  }
   0x1   :  { %v56_v0 = vld [vmem:[%s2739_s4 + $0x10] sm:$0xf]  ;;  %v55_v1 = vld [vmem:[%s2739_s4 + $0x8] sm:$0xff]  ;;  %v48_v2 = vld [vmem:[%s2735_s0] sm:$0xff] }
   0x2   :  { %2063 = vmatprep.subr.msk.mxu0 %vm71_vm0, %v56_v0  ;;  %v50_v3 = vld [vmem:[%s2736_s1] sm:$0xff]  ;;  %v49_v4 = vld [vmem:[%s2735_s0 + $0x8] sm:$0xff] }
   0x3   :  { %2064 = vmatpush3.msk.msra.mxu0 %vm71_vm0, %v56_v0  ;;  %v54_v5 = vld [vmem:[%s2739_s4] sm:$0xff]  ;;  %v52_v6 = vadd.f32 %v50_v3, %v48_v2  ;;  %v51_v7 = vld [vmem:[%s2736_s1 + $0x8] sm:$0xff] }
   0x4   :  { %19 = vsyncpa [#allocation3], 0  ;;  %2065 = vmatprep.subr.mxu0 %v55_v1  ;;  %v53_v8 = vadd.f32 %v51_v7, %v49_v4  ;;  %v153_v9 = vlaneseq  ;;  %v152_v11 = vld [vmem:[%s2738_s3] sm:$0xf]  ;;  %v2255_v16 = vmov 0.0   ;;  %vm2256_vm2 = vmmov 0  }
   0x5   :  { %2066 = vmatpush3.msra.mxu0 %v55_v1  ;;  %2069 = vmatprep.mubr.msk.f32.mxu0 %vm64_vm1, %v52_v6  ;;  %v1966_v18 = vld [vmem:[%s2740_s5] ss:$0 sm:$0xff]  ;;  %s2257_s4 = smov 108   ;;  %vm327_vm3 = vcmask 64512   ;;  %v2431_v41 = vld [vmem:[%s2737_s2 + $0x1] ss:$0 sm:$0xff] }
   0x6   :  { %2067 = vmatprep.subr.mxu0 %v54_v5  ;;  %v154_v10 = vshrl.u32 %v153_v9, 7  ;;  %2087 = vmatprep.subr.mxu1 %v2255_v16  ;;  %v2424_v32 = vld [vmem:[%s2737_s2] ss:$0 sm:$0xff]  ;;  %s2258_s15 = smov 40   ;;  %s2259_s2 = smov 88   ;;  %vm1613_vm4 = vcmask 1041409  }
   0x7   :  { %2068 = vmatpush3.msra.mxu0 %v54_v5  ;;  %2089 = vmatprep.mubr.msk.f32.mxu1 %vm2256_vm2, %v2255_v16  ;;  %s2261_s16 = smov 20   ;;  %s2262_s21 = smov 12   ;;  %vm1658_vm5 = vcmask 326656   ;;  %vm1660_vm6 = vcmask 490496   ;;  %vm1662_vm7 = vcmask 654336   ;;  %vm1664_vm8 = vcmask 818176  }
   0x8   :  { %2070 = vmatmul.mubr.msk.f32.vlgmr.msra.gmra.mxu0 %vm64_vm1, %v53_v8  ;;  %v846_v12 = vsub.s32 2, %v154_v10  ;;  %v1182_v13 = vsub.s32 3, %v154_v10  ;;  %2072 = vmatprep.subr.mxu0 %v2255_v16  ;;  %v155_v22 = vsub.s32 0, %v154_v10  ;;  %v358_v23 = vsub.s32 1, %v154_v10  ;;  %s2263_s25 = smov 60   ;;  %s2264_s3 = smov 80  }
   0x9   :  { %2074 = vmatprep.mubr.msk.f32.mxu0 %vm2256_vm2, %v2255_v16  ;;  %vm1666_vm9 = vcmask 982016   ;;  %vm1668_vm10 = vcmask 97280   ;;  %vm1697_vm11 = vcmask 261120   ;;  %vm1950_vm12 = vcmask 9216  }
   0xa   :  { %v2370_v14 = vrot.slane %v152_v11, %v846_v12  ;;  %v2372_v15 = vrot.slane %v152_v11, %v1182_v13  ;;  %v156_v25 = vrot.slane %v152_v11, %v155_v22  ;;  %v359_v27 = vrot.slane %v152_v11, %v358_v23 }
  0xc8   :  { %v2071_v17 = vpop.f32.mrf.mxu0 }
  0xc9   :  { %v2386_v21 = vadd.f32 %v2071_v17, %v1966_v18 }
  0xca   :  { %v141_v19 = vpop.f32.mrf.mxu0 }
  0xcb   :  { %v2383_v20 = vadd.f32 %v1966_v18, %v141_v19  ;;  %v158_v29 = vmul.f32 %v156_v25, %v2386_v21  ;;  %v361_v30 = vmul.f32 %v359_v27, %v2386_v21 }
  0xcd   :  { %172 = vrot.lane.b32.xlu0 %v2383_v20, %s2257_s4  ;;  %v157_v26 = vmul.f32 %v156_v25, %v2383_v20  ;;  %v360_v31 = vmul.f32 %v359_v27, %v2383_v20 }
  0xd1   :  { %250 = vrot.lane.b32.xlu0 %v2386_v21, %s2257_s4 }
 0x13f   :  { %v2389_v24 = vpop.permute.xlu0 %172 }
 0x140   :  { %2073 = vmatpush3.xpose.msk.msra.mxu0 %vm64_vm1, %v2389_v24 }
 0x141   :  { %2077 = vmatprep.subr.mxu0 %v2255_v16 }
 0x143   :  { %v2395_v28 = vpop.permute.xlu0 %250  ;;  %2075 = vmatmul.mubr.msk.f32.vlgmr.msra.gmra.mxu0 %vm64_vm1, %v157_v26 }
 0x144   :  { %2078 = vmatpush3.xpose.msk.msra.mxu0 %vm64_vm1, %v2395_v28  ;;  %2088 = vmatpush3.xpose.msk.msra.mxu1 %vm64_vm1, %v2395_v28 }
 0x145   :  { %2079 = vmatprep.mubr.msk.f32.mxu0 %vm2256_vm2, %v2255_v16  ;;  %2082 = vmatprep.subr.mxu0 %v2255_v16 }
 0x146   :  { %2097 = vmatprep.subr.mxu1 %v2255_v16 }
 0x147   :  { %2080 = vmatmul.mubr.msk.f32.vlgmr.msra.gmra.mxu0 %vm64_vm1, %v158_v29  ;;  %2090 = vmatmul.mubr.msk.f32.vlgmr.msra.gmra.mxu1 %vm64_vm1, %v361_v30 }
 0x148   :  { %2083 = vmatpush3.xpose.msk.msra.mxu0 %vm64_vm1, %v2389_v24  ;;  %2084 = vmatprep.mubr.msk.f32.mxu0 %vm2256_vm2, %v2255_v16 }
 0x149   :  { %2092 = vmatprep.subr.mxu0 %v2255_v16  ;;  %2099 = vmatprep.mubr.msk.f32.mxu1 %vm2256_vm2, %v2255_v16 }
 0x14b   :  { %2085 = vmatmul.mubr.msk.f32.vlgmr.msra.gmra.mxu0 %vm64_vm1, %v360_v31 }
 0x14c   :  { %2094 = vmatprep.mubr.msk.f32.mxu0 %vm2256_vm2, %v2255_v16 }
 0x203   :  { %v245_v33 = vpop.f32.mrf.mxu0 }
 0x204   :  { %v246_v34 = vadd.f32 %v2424_v32, %v245_v33 }
 0x205   :  { %v2076_v35 = vpop.f32.mrf.mxu0 }
 0x206   :  { %v328_v36 = vsel %vm327_vm3, %v246_v34, -inf }
 0x207   :  { %v504_v37 = vpop.f32.mrf.mxu1  ;;  %329 = vmax.xlane.f32.xlu0 %v328_v36  ;;  %v323_v38 = vpop.f32.mrf.mxu0  ;;  %v848_v36 = vmul.f32 %v2370_v14, %v2383_v20 }
 0x208   :  { %v505_v45 = vadd.f32 %v2431_v41, %v504_v37  ;;  %v324_v47 = vadd.f32 %v2431_v41, %v323_v38  ;;  %v849_v37 = vmul.f32 %v2370_v14, %v2386_v21 }
 0x209   :  { %v2081_v39 = vpop.f32.mrf.mxu0  ;;  %v2091_v40 = vpop.f32.mrf.mxu1 }
 0x20a   :  { %v511_v48 = vsel %vm327_vm3, %v505_v45, -inf  ;;  %v331_v49 = vsel %vm327_vm3, %v324_v47, -inf }
 0x20b   :  { %v431_v42 = vpop.f32.mrf.mxu0 }
 0x20c   :  { %v432_v43 = vadd.f32 %v2424_v32, %v431_v42 }
 0x20d   :  { %v2086_v44 = vpop.f32.mrf.mxu0 }
 0x20e   :  { %v508_v46 = vsel %vm327_vm3, %v432_v43, -inf }
 0x20f   :  { %509 = vmax.xlane.f32.xlu1 %v508_v46 }
 0x213   :  { %512 = vmax.xlane.f32.xlu1 %v511_v48 }
 0x217   :  { %332 = vmax.xlane.f32.xlu1 %v331_v49 }
 0x228   :  { %531 = vrot.lane.b32.xlu1 %v359_v27, %s2258_s15 }
 0x22c   :  { %351 = vrot.lane.b32.xlu1 %v156_v25, %s2258_s15 }
 0x290   :  { %v330_v60 = vpop.xlane.xlu0 %329 }
 0x291   :  { %v334_v61 = vsub.f32 %v246_v34, %v330_v60 }
 0x293   :  { %v336_v63 = vmul.f32 1.442695, %v334_v61 }
 0x298   :  { %v510_v50 = vpop.xlane.xlu1 %509 }
 0x299   :  { %v514_v51 = vsub.f32 %v432_v43, %v510_v50 }
 0x29b   :  { %v516_v52 = vmul.f32 1.442695, %v514_v51 }
 0x29c   :  { %v513_v53 = vpop.xlane.xlu1 %512 }
 0x29d   :  { %2201 = vpow2.f32 %v516_v52  ;;  %v515_v59 = vsub.f32 %v505_v45, %v513_v53 }
 0x29f   :  { %v518_v62 = vmul.f32 1.442695, %v515_v59 }
 0x2a0   :  { %v333_v54 = vpop.xlane.xlu1 %332 }
 0x2a1   :  { %2203 = vpow2.f32 %v518_v62  ;;  %v335_v0 = vsub.f32 %v324_v47, %v333_v54 }
 0x2a2   :  { %2205 = vpow2.f32 %v336_v63 }
 0x2a3   :  { %v338_v1 = vmul.f32 1.442695, %v335_v0 }
 0x2a4   :  { %v532_v55 = vpop.permute.xlu1 %531 }
 0x2a5   :  { %v534_v56 = vmul.f32 %v532_v55, %v2383_v20  ;;  %v535_v2 = vmul.f32 %v532_v55, %v2386_v21  ;;  %2207 = vpow2.f32 %v338_v1 }
 0x2a7   :  { %537 = vrot.lane.b32.xlu0 %v534_v56, %s2259_s2 }
 0x2a8   :  { %v352_v9 = vpop.permute.xlu1 %351 }
 0x2a9   :  { %v354_v10 = vmul.f32 %v352_v9, %v2383_v20  ;;  %v355_v11 = vmul.f32 %v352_v9, %v2386_v21 }
 0x2aa   :  { %v2202_v57 = vpop.eup %2201 }
 0x2ab   :  { %v520_v58 = vsel %vm327_vm3, %v2202_v57, 0.0 }
 0x2ac   :  { %521 = vadd.xlane.f32.xlu1 %v520_v58 }
 0x2ae   :  { %v2204_v3 = vpop.eup %2203 }
 0x2af   :  { %v523_v4 = vsel %vm327_vm3, %v2204_v3, 0.0  ;;  %v2206_v5 = vpop.eup %2205 }
 0x2b0   :  { %v340_v6 = vsel %vm327_vm3, %v2206_v5, 0.0 }
 0x2b2   :  { %v2208_v7 = vpop.eup %2207 }
 0x2b3   :  { %v343_v8 = vsel %vm327_vm3, %v2208_v7, 0.0 }
 0x2bd   :  { %614 = vrot.lane.b32.xlu1 %v535_v2, %s2259_s2 }
 0x2c6   :  { %524 = vadd.xlane.f32.xlu0 %v523_v4 }
 0x2ca   :  { %341 = vadd.xlane.f32.xlu0 %v340_v6 }
 0x2ce   :  { %344 = vadd.xlane.f32.xlu0 %v343_v8 }
 0x2e4   :  { %691 = vrot.lane.b32.xlu0 %v354_v10, %s2259_s2 }
 0x2e8   :  { %768 = vrot.lane.b32.xlu0 %v355_v11, %s2259_s2 }
 0x319   :  { %v538_v12 = vpop.permute.xlu0 %537 }
 0x31a   :  { %2093 = vmatpush3.msra.mxu0 %v538_v12 }
 0x31b   :  { %2102 = vmatprep.subr.mxu0 %v2255_v16 }
 0x335   :  { %v522_v13 = vpop.xlane.xlu1 %521 }
 0x336   :  { %2209 = vrcp.f32 %v522_v13  ;;  %v1185_v13 = vmul.f32 %v2372_v15, %v2386_v21 }
 0x339   :  { %v615_v17 = vpop.permute.xlu1 %614 }
 0x33a   :  { %2098 = vmatpush3.msra.mxu1 %v615_v17 }
 0x33b   :  { %2107 = vmatprep.subr.mxu1 %v2255_v16 }
 0x343   :  { %v2210_v18 = vpop.eup %2209 }
 0x344   :  { %v527_v19 = vmul.f32 %v2210_v18, %v2202_v57 }
 0x346   :  { %2095 = vmatmul.mubr.msk.f32.vlgmr.msra.gmra.mxu0 %vm327_vm3, %v527_v19 }
 0x347   :  { %2104 = vmatprep.mubr.msk.f32.mxu0 %vm2256_vm2, %v2255_v16 }
 0x34f   :  { %v525_v22 = vpop.xlane.xlu0 %524 }
 0x350   :  { %2211 = vrcp.f32 %v525_v22 }
 0x353   :  { %v342_v23 = vpop.xlane.xlu0 %341 }
 0x354   :  { %2213 = vrcp.f32 %v342_v23 }
 0x357   :  { %v345_v25 = vpop.xlane.xlu0 %344 }
 0x358   :  { %2215 = vrcp.f32 %v345_v25 }
 0x35b   :  { %v692_v26 = vpop.permute.xlu0 %691 }
 0x35c   :  { %2103 = vmatpush3.msra.mxu0 %v692_v26 }
 0x35d   :  { %v2212_v27 = vpop.eup %2211  ;;  %2112 = vmatprep.subr.mxu0 %v2255_v16 }
 0x35e   :  { %v529_v29 = vmul.f32 %v2212_v27, %v2204_v3 }
 0x35f   :  { %v769_v30 = vpop.permute.xlu0 %768 }
 0x360   :  { %2100 = vmatmul.mubr.msk.f32.vlgmr.msra.gmra.mxu1 %vm327_vm3, %v529_v29 }
 0x361   :  { %v2214_v31 = vpop.eup %2213  ;;  %2108 = vmatpush3.msra.mxu1 %v769_v30  ;;  %2109 = vmatprep.mubr.msk.f32.mxu1 %vm2256_vm2, %v2255_v16 }
 0x362   :  { %v347_v33 = vmul.f32 %v2214_v31, %v2206_v5  ;;  %2117 = vmatprep.subr.mxu1 %v2255_v16 }
 0x364   :  { %2105 = vmatmul.mubr.msk.f32.vlgmr.msra.gmra.mxu0 %vm327_vm3, %v347_v33 }
 0x365   :  { %v2216_v34 = vpop.eup %2215  ;;  %2113 = vmatpush3.xpose.msk.msra.mxu0 %vm64_vm1, %v2389_v24  ;;  %2114 = vmatprep.mubr.msk.f32.mxu0 %vm2256_vm2, %v2255_v16 }
 0x366   :  { %v349_v35 = vmul.f32 %v2216_v34, %v2208_v7  ;;  %2122 = vmatprep.subr.mxu0 %v2255_v16 }
 0x368   :  { %2110 = vmatmul.mubr.msk.f32.vlgmr.msra.gmra.mxu1 %vm327_vm3, %v349_v35  ;;  %2115 = vmatmul.mubr.msk.f32.vlgmr.msra.gmra.mxu0 %vm64_vm1, %v848_v36 }
 0x369   :  { %2118 = vmatpush3.xpose.msk.msra.mxu1 %vm64_vm1, %v2395_v28  ;;  %2119 = vmatprep.mubr.msk.f32.mxu1 %vm2256_vm2, %v2255_v16 }
 0x36a   :  { %2127 = vmatprep.subr.mxu1 %v2255_v16  ;;  %2124 = vmatprep.mubr.msk.f32.mxu0 %vm2256_vm2, %v2255_v16 }
 0x36c   :  { %2120 = vmatmul.mubr.msk.f32.vlgmr.msra.gmra.mxu1 %vm64_vm1, %v849_v37 }
 0x36d   :  { %2129 = vmatprep.mubr.msk.f32.mxu1 %vm2256_vm2, %v2255_v16 }
 0x406   :  { %v609_v38 = vpop.f32.mrf.mxu0 }
 0x408   :  { %v2096_v39 = vpop.f32.mrf.mxu0 }
 0x420   :  { %v686_v40 = vpop.f32.mrf.mxu1 }
 0x422   :  { %v2101_v42 = vpop.f32.mrf.mxu1 }
 0x424   :  { %v763_v43 = vpop.f32.mrf.mxu0 }
 0x425   :  { %v2485_v44 = vadd.f32 %v763_v43, %v609_v38 }
 0x426   :  { %v2106_v45 = vpop.f32.mrf.mxu0 }
 0x428   :  { %v840_v46 = vpop.f32.mrf.mxu1  ;;  %v919_v47 = vpop.f32.mrf.mxu0 }
 0x429   :  { %v841_v48 = vadd.f32 %v840_v46, %v686_v40  ;;  %v920_v49 = vadd.f32 %v2424_v32, %v919_v47 }
 0x42a   :  { %v2111_v50 = vpop.f32.mrf.mxu1  ;;  %v2116_v51 = vpop.f32.mrf.mxu0 }
 0x42b   :  { %v996_v52 = vsel %vm327_vm3, %v920_v49, -inf }
 0x42c   :  { %v992_v53 = vpop.f32.mrf.mxu1  ;;  %997 = vmax.xlane.f32.xlu0 %v996_v52 }
 0x42d   :  { %v993_v54 = vadd.f32 %v2431_v41, %v992_v53  ;;  %v1517_v53 = vld [vmem:[%s2741_s6 + $0x8] sm:$0xff] }
 0x42e   :  { %v2121_v55 = vpop.f32.mrf.mxu1 }
 0x42f   :  { %v999_v56 = vsel %vm327_vm3, %v993_v54, -inf }
 0x430   :  { %1000 = vmax.xlane.f32.xlu1 %v999_v56 }
 0x442   :  { %1019 = vrot.lane.b32.xlu0 %v2370_v14, %s2258_s15 }
 0x4b5   :  { %v998_v57 = vpop.xlane.xlu0 %997 }
 0x4b6   :  { %v1002_v58 = vsub.f32 %v920_v49, %v998_v57 }
 0x4b8   :  { %v1004_v63 = vmul.f32 1.442695, %v1002_v58 }
 0x4b9   :  { %v1001_v59 = vpop.xlane.xlu1 %1000  ;;  %v1020_v60 = vpop.permute.xlu0 %1019 }
 0x4ba   :  { %v1003_v61 = vsub.f32 %v993_v54, %v1001_v59  ;;  %v1023_v62 = vmul.f32 %v1020_v60, %v2386_v21  ;;  %v1022_v4 = vmul.f32 %v1020_v60, %v2383_v20  ;;  %v1516_v54 = vld [vmem:[%s2741_s6] sm:$0xff] }
 0x4bc   :  { %v1006_v0 = vmul.f32 1.442695, %v1003_v61  ;;  %1102 = vrot.lane.b32.xlu0 %v1023_v62, %s2259_s2  ;;  %v1685_v61 = vld [vmem:[%s2743_s8 + $0x78] sm:$0xff]  ;;  %v1684_v62 = vld [vmem:[%s2743_s8 + $0x70] sm:$0xff] }
 0x4be   :  { %2217 = vpow2.f32 %v1006_v0  ;;  %v1682_v0 = vld [vmem:[%s2743_s8 + $0x60] sm:$0xff] }
 0x4bf   :  { %2219 = vpow2.f32 %v1004_v63  ;;  %v1683_v63 = vld [vmem:[%s2743_s8 + $0x68] sm:$0xff] }
 0x4cb   :  { %v2218_v1 = vpop.eup %2217 }
 0x4cc   :  { %v1011_v2 = vsel %vm327_vm3, %v2218_v1, 0.0  ;;  %v2220_v3 = vpop.eup %2219 }
 0x4cd   :  { %1012 = vadd.xlane.f32.xlu1 %v1011_v2  ;;  %v1008_v14 = vsel %vm327_vm3, %v2220_v3, 0.0  ;;  %v1680_v2 = vld [vmem:[%s2743_s8 + $0x50] sm:$0xff] }
 0x4d1   :  { %1009 = vadd.xlane.f32.xlu1 %v1008_v14  ;;  %v1678_v14 = vld [vmem:[%s2743_s8 + $0x40] sm:$0xff] }
 0x4e2   :  { %1025 = vrot.lane.b32.xlu1 %v1022_v4, %s2259_s2  ;;  %v1677_v4 = vld [vmem:[%s2743_s8 + $0x38] sm:$0xff] }
 0x52e   :  { %v1103_v5 = vpop.permute.xlu0 %1102 }
 0x52f   :  { %2128 = vmatpush3.msra.mxu1 %v1103_v5  ;;  %v1676_v5 = vld [vmem:[%s2743_s8 + $0x30] sm:$0xff] }
 0x530   :  { %2137 = vmatprep.subr.mxu1 %v2255_v16 }
 0x556   :  { %v1013_v6 = vpop.xlane.xlu1 %1012 }
 0x557   :  { %2221 = vrcp.f32 %v1013_v6  ;;  %v1675_v6 = vld [vmem:[%s2743_s8 + $0x28] sm:$0xff] }
 0x55a   :  { %v1010_v7 = vpop.xlane.xlu1 %1009 }
 0x55b   :  { %2223 = vrcp.f32 %v1010_v7  ;;  %v1674_v7 = vld [vmem:[%s2743_s8 + $0x20] sm:$0xff] }
 0x55e   :  { %v1026_v8 = vpop.permute.xlu1 %1025 }
 0x55f   :  { %2123 = vmatpush3.msra.mxu0 %v1026_v8  ;;  %v1673_v8 = vld [vmem:[%s2743_s8 + $0x18] sm:$0xff] }
 0x560   :  { %2132 = vmatprep.subr.mxu0 %v2255_v16 }
 0x564   :  { %v2222_v9 = vpop.eup %2221 }
 0x565   :  { %v1017_v10 = vmul.f32 %v2222_v9, %v2218_v1  ;;  %v1681_v1 = vld [vmem:[%s2743_s8 + $0x58] sm:$0xff]  ;;  %v1996_v9 = vld [vmem:[%s2742_s7] ss:$0 sm:$0xff]  ;;  %s2265_s7 = smov 120  }
 0x567   :  { %2130 = vmatmul.mubr.msk.f32.vlgmr.msra.gmra.mxu1 %vm327_vm3, %v1017_v10  ;;  %v1672_v10 = vld [vmem:[%s2743_s8 + $0x10] sm:$0xff] }
 0x568   :  { %v2224_v11 = vpop.eup %2223  ;;  %2138 = vmatpush3.xpose.msk.msra.mxu1 %vm64_vm1, %v2395_v28  ;;  %2139 = vmatprep.mubr.msk.f32.mxu1 %vm2256_vm2, %v2255_v16  ;;  %v1184_v28 = vmul.f32 %v2372_v15, %v2383_v20 }
 0x569   :  { %v1015_v12 = vmul.f32 %v2224_v11, %v2220_v3  ;;  %2147 = vmatprep.subr.mxu1 %v2255_v16  ;;  %v1679_v3 = vld [vmem:[%s2743_s8 + $0x48] sm:$0xff] }
 0x56a   :  { %v1671_v11 = vld [vmem:[%s2743_s8 + $0x8] sm:$0xff] }
 0x56b   :  { %2125 = vmatmul.mubr.msk.f32.vlgmr.msra.gmra.mxu0 %vm327_vm3, %v1015_v12  ;;  %2140 = vmatmul.mubr.msk.f32.vlgmr.msra.gmra.mxu1 %vm64_vm1, %v1185_v13 }
 0x56c   :  { %2133 = vmatpush3.xpose.msk.msra.mxu0 %vm64_vm1, %v2389_v24  ;;  %2134 = vmatprep.mubr.msk.f32.mxu0 %vm2256_vm2, %v2255_v16 }
 0x56d   :  { %2142 = vmatprep.subr.mxu0 %v2255_v16  ;;  %2149 = vmatprep.mubr.msk.f32.mxu1 %vm2256_vm2, %v2255_v16 }
 0x56f   :  { %2135 = vmatmul.mubr.msk.f32.vlgmr.msra.gmra.mxu0 %vm64_vm1, %v1184_v28 }
 0x570   :  { %2144 = vmatprep.mubr.msk.f32.mxu0 %vm2256_vm2, %v2255_v16 }
 0x627   :  { %v1174_v17 = vpop.f32.mrf.mxu1 }
 0x628   :  { %v2523_v18 = vadd.f32 %v1174_v17, %v841_v48 }
 0x629   :  { %v2131_v24 = vpop.f32.mrf.mxu1 }
 0x62a   :  { %v1689_v24 = vld [vmem:[%s2743_s8 + $0x98] sm:$0xff] }
 0x62b   :  { %v1097_v19 = vpop.f32.mrf.mxu0  ;;  %v1328_v22 = vpop.f32.mrf.mxu1 }
 0x62c   :  { %v1178_v23 = vadd.f32 %v1097_v19, %v2485_v44  ;;  %v1329_v25 = vadd.f32 %v2431_v41, %v1328_v22 }
 0x62d   :  { %v2126_v26 = vpop.f32.mrf.mxu0  ;;  %v2141_v27 = vpop.f32.mrf.mxu1 }
 0x62e   :  { %v1335_v29 = vsel %vm327_vm3, %v1329_v25, -inf }
 0x62f   :  { %1336 = vmax.xlane.f32.xlu1 %v1335_v29  ;;  %v1255_v30 = vpop.f32.mrf.mxu0 }
 0x630   :  { %v1256_v31 = vadd.f32 %v2424_v32, %v1255_v30 }
 0x631   :  { %v2136_v33 = vpop.f32.mrf.mxu0 }
 0x632   :  { %v1332_v34 = vsel %vm327_vm3, %v1256_v31, -inf  ;;  %v1688_v33 = vld [vmem:[%s2743_s8 + $0x90] sm:$0xff] }
 0x633   :  { %1333 = vmax.xlane.f32.xlu0 %v1332_v34  ;;  %v1687_v34 = vld [vmem:[%s2743_s8 + $0x88] sm:$0xff] }
 0x649   :  { %1355 = vrot.lane.b32.xlu0 %v2372_v15, %s2258_s15 }
 0x6b8   :  { %v1337_v35 = vpop.xlane.xlu1 %1336 }
 0x6b9   :  { %v1339_v36 = vsub.f32 %v1329_v25, %v1337_v35 }
 0x6bb   :  { %v1342_v37 = vmul.f32 1.442695, %v1339_v36 }
 0x6bc   :  { %v1334_v38 = vpop.xlane.xlu0 %1333 }
 0x6bd   :  { %2225 = vpow2.f32 %v1342_v37  ;;  %v1338_v41 = vsub.f32 %v1256_v31, %v1334_v38 }
 0x6bf   :  { %v1340_v39 = vmul.f32 1.442695, %v1338_v41 }
 0x6c0   :  { %v1356_v40 = vpop.permute.xlu0 %1355 }
 0x6c1   :  { %2227 = vpow2.f32 %v1340_v39  ;;  %v1358_v42 = vmul.f32 %v1356_v40, %v2383_v20  ;;  %v1359_v45 = vmul.f32 %v1356_v40, %v2386_v21  ;;  %v1518_v21 = vld [vmem:[%s2741_s6 + $0x10] sm:$0xf]  ;;  %v1686_v39 = vld [vmem:[%s2743_s8 + $0x80] sm:$0xff] }
 0x6c3   :  { %1361 = vrot.lane.b32.xlu0 %v1358_v42, %s2259_s2  ;;  %v1779_v42 = vld [vmem:[%s2745_s10 + $0x38] sm:$0xf] }
 0x6ca   :  { %v2226_v32 = vpop.eup %2225 }
 0x6cb   :  { %v1347_v43 = vsel %vm327_vm3, %v2226_v32, 0.0 }
 0x6cc   :  { %1348 = vadd.xlane.f32.xlu1 %v1347_v43 }
 0x6ce   :  { %v2228_v44 = vpop.eup %2227 }
 0x6cf   :  { %v1344_v15 = vsel %vm327_vm3, %v2228_v44, 0.0 }
 0x6d0   :  { %1345 = vadd.xlane.f32.xlu1 %v1344_v15  ;;  %v1777_v15 = vld [vmem:[%s2745_s10 + $0x28] sm:$0xff] }
 0x6e1   :  { %1438 = vrot.lane.b32.xlu1 %v1359_v45, %s2259_s2  ;;  %s2260_s2 = smov 100  }
 0x735   :  { %v1362_v46 = vpop.permute.xlu0 %1361 }
 0x736   :  { %2143 = vmatpush3.msra.mxu0 %v1362_v46  ;;  %v1776_v46 = vld [vmem:[%s2745_s10 + $0x20] sm:$0xff] }
 0x737   :  { %2152 = vmatprep.subr.msk.mxu0 %vm71_vm0, %v1518_v21 }
 0x755   :  { %v1349_v47 = vpop.xlane.xlu1 %1348 }
 0x756   :  { %2229 = vrcp.f32 %v1349_v47 }
 0x759   :  { %v1346_v48 = vpop.xlane.xlu1 %1345 }
 0x75a   :  { %2231 = vrcp.f32 %v1346_v48 }
 0x75d   :  { %v1439_v20 = vpop.permute.xlu1 %1438 }
 0x75e   :  { %2148 = vmatpush3.msra.mxu1 %v1439_v20  ;;  %v1775_v20 = vld [vmem:[%s2745_s10 + $0x18] sm:$0xff] }
 0x75f   :  { %1701 = vmatprep.subr.mxu1 %v2255_v16 }
 0x763   :  { %v2230_v49 = vpop.eup %2229 }
 0x764   :  { %v1353_v50 = vmul.f32 %v2230_v49, %v2226_v32  ;;  %v1778_v32 = vld [vmem:[%s2745_s10 + $0x30] sm:$0xff] }
 0x766   :  { %2150 = vmatmul.mubr.msk.f32.vlgmr.msra.gmra.mxu1 %vm327_vm3, %v1353_v50 }
 0x767   :  { %v2232_v51 = vpop.eup %2231  ;;  %1702 = vmatpush1.msra.mxu1 %v1685_v61 }
 0x768   :  { %v1351_v52 = vmul.f32 %v2232_v51, %v2228_v44  ;;  %1703 = vmatprep.subr.mxu1 %v2255_v16 }
 0x769   :  { %1704 = vmatpush1.msra.mxu1 %v1684_v62 }
 0x76a   :  { %2145 = vmatmul.mubr.msk.f32.vlgmr.msra.gmra.mxu0 %vm327_vm3, %v1351_v52  ;;  %1705 = vmatprep.subr.mxu1 %v2255_v16 }
 0x76b   :  { %2153 = vmatpush3.msk.msra.mxu0 %vm71_vm0, %v1518_v21  ;;  %1706 = vmatpush1.msra.mxu1 %v1683_v63 }
 0x76c   :  { %2154 = vmatprep.subr.mxu0 %v1517_v53  ;;  %1707 = vmatprep.subr.mxu1 %v2255_v16 }
 0x76d   :  { %2155 = vmatpush3.msra.mxu0 %v1517_v53  ;;  %1708 = vmatpush1.msra.mxu1 %v1682_v0  ;;  %v1774_v0 = vld [vmem:[%s2745_s10 + $0x10] sm:$0xff] }
 0x76e   :  { %2156 = vmatprep.subr.mxu0 %v1516_v54  ;;  %1709 = vmatprep.subr.mxu1 %v2255_v16 }
 0x76f   :  { %2157 = vmatpush3.msra.mxu0 %v1516_v54  ;;  %1710 = vmatpush1.msra.mxu1 %v1681_v1  ;;  %v1773_v1 = vld [vmem:[%s2745_s10 + $0x8] sm:$0xff] }
 0x770   :  { %2161 = vmatprep.subr.mxu0 %v2255_v16  ;;  %1711 = vmatprep.subr.mxu1 %v2255_v16 }
 0x771   :  { %1712 = vmatpush1.msra.mxu1 %v1680_v2  ;;  %v1772_v2 = vld [vmem:[%s2745_s10] sm:$0xff] }
 0x772   :  { %1713 = vmatprep.subr.mxu1 %v2255_v16 }
 0x773   :  { %1714 = vmatpush1.msra.mxu1 %v1679_v3  ;;  %v2000_v3 = vld [vmem:[%s2744_s9] ss:$0 sm:$0xff] }
 0x774   :  { %1715 = vmatprep.subr.mxu1 %v2255_v16 }
 0x775   :  { %1716 = vmatpush1.msra.mxu1 %v1678_v14 }
 0x776   :  { %1717 = vmatprep.subr.mxu1 %v2255_v16 }
 0x777   :  { %1718 = vmatpush1.msra.mxu1 %v1677_v4 }
 0x778   :  { %1719 = vmatprep.subr.mxu1 %v2255_v16 }
 0x779   :  { %1720 = vmatpush1.msra.mxu1 %v1676_v5 }
 0x77a   :  { %1721 = vmatprep.subr.mxu1 %v2255_v16 }
 0x77b   :  { %1722 = vmatpush1.msra.mxu1 %v1675_v6 }
 0x77c   :  { %1723 = vmatprep.subr.mxu1 %v2255_v16 }
 0x77d   :  { %1724 = vmatpush1.msra.mxu1 %v1674_v7  ;;  %v1866_v7 = vld [vmem:[%s2747_s12 + $0x10] sm:$0xf] }
 0x77e   :  { %1725 = vmatprep.subr.mxu1 %v2255_v16 }
 0x77f   :  { %1726 = vmatpush1.msra.mxu1 %v1673_v8  ;;  %v1865_v8 = vld [vmem:[%s2747_s12 + $0x8] sm:$0xff] }
 0x780   :  { %1727 = vmatprep.subr.mxu1 %v2255_v16 }
 0x781   :  { %1728 = vmatpush1.msra.mxu1 %v1672_v10  ;;  %v2002_v10 = vld [vmem:[%s2746_s11] ss:$0 sm:$0xff] }
 0x782   :  { %1729 = vmatprep.subr.mxu1 %v2255_v16 }
 0x783   :  { %1730 = vmatpush1.msra.mxu1 %v1671_v11 }
 0x784   :  { %1731 = vmatprep.subr.mxu1 %v2255_v16 }
 0x826   :  { %v1510_v55 = vpop.f32.mrf.mxu1 }
 0x827   :  { %v1515_v59 = vadd.f32 %v1510_v55, %v2523_v18  ;;  %v1670_v18 = vld [vmem:[%s2743_s8] sm:$0xff]  ;;  %s2266_s8 = smov [#allocation2]  }
 0x828   :  { %v2151_v56 = vpop.f32.mrf.mxu1  ;;  %1732 = vmatpush1.msra.mxu1 %v1670_v18 }
 0x829   :  { %1757 = vmatprep.subr.mxu1 %v2255_v16 }
 0x82a   :  { %v1433_v57 = vpop.f32.mrf.mxu0  ;;  %1758 = vmatpush2.msra.mxu1 %v1689_v24 }
 0x82b   :  { %v1514_v58 = vadd.f32 %v1433_v57, %v1178_v23  ;;  %1759 = vmatprep.subr.mxu1 %v2255_v16 }
 0x82c   :  { %v2146_v60 = vpop.f32.mrf.mxu0  ;;  %1760 = vmatpush2.msra.mxu1 %v1688_v33 }
 0x82d   :  { %2158 = vmatprep.mubr.msk.f32.mxu0 %vm64_vm1, %v1514_v58  ;;  %1761 = vmatprep.subr.mxu1 %v2255_v16 }
 0x82e   :  { %2159 = vmatmul.mubr.msk.f32.vlgmr.msra.gmra.mxu0 %vm64_vm1, %v1515_v59  ;;  %1762 = vmatpush2.msra.mxu1 %v1687_v34 }
 0x82f   :  { %2177 = vmatprep.mubr.msk.f32.mxu0 %vm2256_vm2, %v2255_v16  ;;  %1763 = vmatprep.subr.mxu1 %v2255_v16 }
 0x830   :  { %1764 = vmatpush2.msra.mxu1 %v1686_v39  ;;  %2162 = vmatpush3.msk.msra.mxu0 %vm71_vm0, %v1779_v42 }
 0x831   :  { %2163 = vmatprep.subr.mxu0 %v2255_v16 }
 0x832   :  { %2164 = vmatpush3.msra.mxu0 %v1778_v32 }
 0x833   :  { %2165 = vmatprep.subr.mxu0 %v2255_v16 }
 0x834   :  { %2166 = vmatpush3.msra.mxu0 %v1777_v15 }
 0x835   :  { %2167 = vmatprep.subr.mxu0 %v2255_v16 }
 0x836   :  { %2168 = vmatpush3.msra.mxu0 %v1776_v46 }
 0x837   :  { %2169 = vmatprep.subr.mxu0 %v2255_v16 }
 0x838   :  { %2170 = vmatpush3.msra.mxu0 %v1775_v20 }
 0x839   :  { %2171 = vmatprep.subr.mxu0 %v2255_v16 }
 0x83a   :  { %2172 = vmatpush3.msra.mxu0 %v1774_v0 }
 0x83b   :  { %2173 = vmatprep.subr.mxu0 %v2255_v16 }
 0x83c   :  { %2174 = vmatpush3.msra.mxu0 %v1773_v1 }
 0x83d   :  { %2175 = vmatprep.subr.mxu0 %v2255_v16 }
 0x83e   :  { %2176 = vmatpush3.msra.mxu0 %v1772_v2 }
 0x83f   :  { %2180 = vmatprep.subr.mxu0 %v2255_v16 }
 0x8ee   :  { %v2160_v12 = vpop.f32.mrf.mxu0 }
 0x8ef   :  { %v2619_v13 = vadd.f32 %v2160_v12, %v1996_v9 }
 0x8f0   :  { %v1601_v28 = vpop.f32.mrf.mxu0 }
 0x8f1   :  { %v2622_v17 = vadd.f32 %v1996_v9, %v1601_v28  ;;  %v1612_v19 = vrot.slane %v2619_v13, 7  ;;  %v1640_v23 = vrot.slane %v2619_v13, 4  ;;  %v1652_v35 = vrot.slane %v2619_v13, 6  ;;  %v1864_v9 = vld [vmem:[%s2747_s12] sm:$0xff] }
 0x8f2   :  { %v1622_v36 = vrot.slane %v2619_v13, 1  ;;  %v1628_v40 = vrot.slane %v2619_v13, 2  ;;  %v1634_v45 = vrot.slane %v2619_v13, 3  ;;  %v1646_v49 = vrot.slane %v2619_v13, 5 }
 0x8f3   :  { %v1639_v22 = vrot.slane %v2622_v17, 5  ;;  %v1616_v25 = vrot.slane %v2622_v17, 1  ;;  %v2638_v26 = vsel %vm1613_vm4, %v1612_v19, %v2622_v17  ;;  %v1651_v30 = vrot.slane %v2622_v17, 7 }
 0x8f4   :  { %v1621_v31 = vrot.slane %v2622_v17, 2  ;;  %v1627_v41 = vrot.slane %v2622_v17, 3  ;;  %v1633_v44 = vrot.slane %v2622_v17, 4  ;;  %v1645_v48 = vrot.slane %v2622_v17, 6  ;;  %v2005_v17 = vld [vmem:[%s2748_s13] ss:$0 sm:$0xff] }
 0x8f5   :  { %v1641_v27 = vsel %vm1613_vm4, %v1640_v23, %v1639_v22  ;;  %v1617_v29 = vsel %vm1613_vm4, %v2619_v13, %v1616_v25  ;;  %v1653_v37 = vsel %vm1613_vm4, %v1652_v35, %v1651_v30 }
 0x8f6   :  { %1642 = vrot.lane.b32.xlu1 %v1641_v27, %s2260_s2  ;;  %1618 = vrot.lane.b32.xlu0 %v1617_v29, %s2261_s16  ;;  %v1623_v38 = vsel %vm1613_vm4, %v1622_v36, %v1621_v31  ;;  %v1629_v43 = vsel %vm1613_vm4, %v1628_v40, %v1627_v41  ;;  %v1635_v47 = vsel %vm1613_vm4, %v1634_v45, %v1633_v44 }
 0x8f7   :  { %v1647_v50 = vsel %vm1613_vm4, %v1646_v49, %v1645_v48 }
 0x8fa   :  { %1654 = vrot.lane.b32.xlu1 %v1653_v37, %s2262_s21  ;;  %1624 = vrot.lane.b32.xlu0 %v1623_v38, %s2258_s15  ;;  %s1958_s15 = sshll.u32 %s2266_s8, 4  ;;  %s1959_s15 = int_to_ptr.vmem [resolvable:$true] %s1958_s15 }
 0x8fb   :  { %s2233_s12 = scalar_lea.vmem %s1959_s15, 32  ;;  %p2238_p1 = scmp.lt.s32.totalorder %s1959_s15, %s1959_s15 }
 0x8fc   :  { %p2234_p0 = scmp.ne.s32.totalorder %s1959_s15, %s2233_s12  ;;  %p2239_p2 = scmp.lt.s32.totalorder %s2233_s12, %s2233_s12 }
 0x8fe   :  { %1630 = vrot.lane.b32.xlu0 %v1629_v43, %s2263_s25  ;;  %p2240_p3 = por %p2239_p2, %p2238_p1 }
 0x900   :  { %p2241_p4 = pnand %p2240_p3, %p2234_p0 }
 0x902   :  { %1636 = vrot.lane.b32.xlu0 %v1635_v47, %s2264_s3 }
 0x906   :  { %1648 = vrot.lane.b32.xlu0 %v1647_v50, %s2265_s7 }
 0x968   :  { %v1619_v51 = vpop.permute.xlu0 %1618  ;;  %v1643_v53 = vpop.permute.xlu1 %1642 }
 0x969   :  { %v1657_v54 = vsel %vm64_vm1, %v2638_v26, %v1619_v51 }
 0x96c   :  { %v1625_v52 = vpop.permute.xlu0 %1624  ;;  %v1655_v59 = vpop.permute.xlu1 %1654 }
 0x96d   :  { %v1659_v55 = vsel %vm1658_vm5, %v1657_v54, %v1625_v52 }
 0x970   :  { %v1631_v21 = vpop.permute.xlu0 %1630 }
 0x971   :  { %v1661_v56 = vsel %vm1660_vm6, %v1659_v55, %v1631_v21 }
 0x974   :  { %v1637_v57 = vpop.permute.xlu0 %1636 }
 0x975   :  { %v1663_v58 = vsel %vm1662_vm7, %v1661_v56, %v1637_v57 }
 0x976   :  { %v1665_v61 = vsel %vm1664_vm8, %v1663_v58, %v1643_v53 }
 0x978   :  { %v1649_v60 = vpop.permute.xlu0 %1648 }
 0x979   :  { %v1667_v62 = vsel %vm1666_vm9, %v1665_v61, %v1649_v60  ;;  %v1669_v63 = vsel %vm1668_vm10, %v1649_v60, %v1655_v59 }
 0x97a   :  { %2001 = vmatprep.mubr.msk.f32.mxu1 %vm1697_vm11, %v1669_v63 }
 0x97b   :  { %1766 = vmatmul.mubr.f32.vlgmr.msra.gmra.mxu1 %v1667_v62 }
 0xa3b   :  { %v1767_v14 = vpop.f32.mrf.mxu1 }
 0xa3c   :  { %v1768_v4 = vadd.f32 %v2000_v3, %v1767_v14 }
 0xa3d   :  { %v1769_v5 = vpop.f32.mrf.mxu1 }
 0xa3e   :  { %v1771_v6 = vmax.f32 %v1768_v4, 0.0 }
 0xa40   :  { %2178 = vmatmul.mubr.msk.f32.vlgmr.msra.gmra.mxu0 %vm1660_vm6, %v1771_v6 }
 0xa41   :  { %2186 = vmatprep.mubr.msk.f32.mxu0 %vm2256_vm2, %v2255_v16  ;;  %2181 = vmatpush3.msk.msra.mxu0 %vm71_vm0, %v1866_v7 }
 0xa42   :  { %2182 = vmatprep.subr.mxu0 %v2255_v16 }
 0xa43   :  { %2183 = vmatpush3.msra.mxu0 %v1865_v8 }
 0xa44   :  { %2184 = vmatprep.subr.mxu0 %v2255_v16 }
 0xa45   :  { %2185 = vmatpush3.msra.mxu0 %v1864_v9 }
 0xb00   :  { %v1859_v11 = vpop.f32.mrf.mxu0 }
 0xb01   :  { %v1860_v12 = vadd.f32 %v2002_v10, %v1859_v11 }
 0xb02   :  { %v2179_v13 = vpop.f32.mrf.mxu0 }
 0xb03   :  { %v1863_v28 = vmax.f32 %v1860_v12, 0.0 }
 0xb05   :  { %2187 = vmatmul.mubr.msk.f32.vlgmr.msra.gmra.mxu0 %vm64_vm1, %v1863_v28 }
 0xbc5   :  { %v1946_v18 = vpop.f32.mrf.mxu0 }
 0xbc6   :  { %v1947_v16 = vadd.f32 %v2005_v17, %v1946_v18 }
 0xbc7   :  { %v2188_v24 = vpop.f32.mrf.mxu0 }
 0xbc8   :  { %1951 = vst.msk [vmem:[#allocation2] sm:$0x3] %vm1950_vm12, %v1947_v16 }
 0xbc9   :  { %2244 = shalt.err (!%p2241_p4)
}
 0xbca   :  { %1961 = dma.vmem_to_hbm [thread:$0]  %s1959_s15, 32, %s2749_s14, [#allocation3]  }
 0xbcb   :  { %2253 = dma.done.wait [#allocation3], 32  }
 0xbcc   :  { %2254 = vsyncadd [#allocation3], 4294967264 }
 0xbcd   :  { %1965 = vsyncpa [#allocation3], 1 }

</bundles_post_ra>
